<compile_context>
chip_gen: v6e
topology: v6e:2x2x1
jax: 0.10.0
libtpu: 0.0.40
codegen_flags: <defaults>
</compile_context>

<pallas_src>
import jax
import jax.numpy as jnp
from jax.experimental import pallas as pl
from jax.experimental.pallas import tpu as pltpu

ALPHA = 1.0
GAMMA = 2  # focal exponent (Python int); ==2 takes the two-multiply fast path


def _round_up(x, m):
    return ((x + m - 1) // m) * m


def _make_kernel(inv_p):
    """inv_p = 1 / (true number of spatial positions) — static Python float."""

    def kernel(patches_ref, convw_ref, fcw_ref, tgt_ref, fcb_ref,
               out_ref, loss_ref, acc_ref):
        p = pl.program_id(0)
        B = patches_ref.shape[0]

        # --- init pooled-sum accumulator on first tile ---
        @pl.when(p == 0)
        def _init():
            acc_ref[...] = jnp.zeros_like(acc_ref)

        # --- per-tile: conv-as-matmul -> swish -> fold into pooled sum ---
        w = convw_ref[...]                                      # (K, C) bf16, resident
        parts = []
        for bi in range(B):                                     # static unroll, B is small
            xb = patches_ref[bi]                                # (K, TILE_P) bf16
            # "TN" dot: contract the sublane K axis of the patch tile against the K axis of
            # the weight; f32 accumulation on the MXU. Output (TILE_P, C).
            f = jax.lax.dot_general(
                xb, w, (((0,), (0,)), ((), ())),
                preferred_element_type=jnp.float32)
            f = f * jax.nn.sigmoid(f)                           # swish / SiLU (f32)
            parts.append(jnp.sum(f, axis=0, keepdims=True))     # (1, C) partial pooled sum
        acc_ref[...] += jnp.concatenate(parts, axis=0)          # (B, C)

        # --- epilogue only on the last tile: pool mean, fc, focal BCE loss ---
        @pl.when(p == pl.num_programs(0) - 1)
        def _fini():
            # F.adaptive_avg_pool2d(out, 1).view(B, -1)
            pooled = acc_ref[...] * inv_p                       # (B, C) f32

            # self.fc(out) as a VPU multiply + lane reduction (avoids an N=1 MXU matmul)
            fcw = fcw_ref[...]                                  # (1, C) f32
            logits = (jnp.sum(pooled * fcw, axis=-1, keepdims=True)
                      + fcb_ref[0, 0])                          # (B, 1) f32
            out_ref[...] = logits.astype(out_ref.dtype)

            # CustomLoss: BCEWithLogitsLoss(reduction='mean') -> focal transform -> mean
            t = tgt_ref[...]                                    # (B, 1)
            per_elem = (jnp.maximum(logits, 0.0) - logits * t
                        + jnp.log1p(jnp.exp(-jnp.abs(logits))))  # stable BCE-with-logits
            bce = jnp.mean(per_elem)                            # scalar mean BCE
            pt = jnp.exp(-bce)
            one_minus_pt = 1.0 - pt
            if GAMMA == 2:
                omp_pow = one_minus_pt * one_minus_pt
            else:
                omp_pow = one_minus_pt ** GAMMA
            focal = ALPHA * omp_pow * bce
            loss_ref[...] = jnp.full((1, 1), focal, dtype=loss_ref.dtype)

    return kernel


def net_efficientnet_forward(image_nchw, target, conv_w, fc_w, fc_b, *, tile_p=2048):
    """Returns (out, loss) matching Net_Efficientnet.forward(image, target)."""
    B, Cin, H, W = image_nchw.shape
    K, C = conv_w.shape

    # --- glue: im2col for the 3x3 / stride-2 / TF-SAME synthetic stem conv ---
    # Built directly from NCHW so the patch tensor comes out as (B, K, P): spatial positions on
    # the lane axis (lane-dense DMA), taps*channels (K=27) on the sublane axis.
    KH = KW = 3
    S = 2
    Ho, Wo = (H + S - 1) // S, (W + S - 1) // S
    pad_h = max((Ho - 1) * S + KH - H, 0)
    pad_w = max((Wo - 1) * S + KW - W, 0)
    xp = jnp.pad(image_nchw, ((0, 0), (0, 0),
                              (pad_h // 2, pad_h - pad_h // 2),
                              (pad_w // 2, pad_w - pad_w // 2)))
    taps = []
    for dy in range(KH):
        for dx in range(KW):
            taps.append(xp[:, :, dy:dy + S * Ho:S, dx:dx + S * Wo:S])   # (B, Cin, Ho, Wo)
    patches = jnp.stack(taps, axis=1).reshape(B, KH * KW * Cin, Ho * Wo)  # (B, K, P)
    assert patches.shape[1] == K

    # --- tiling over P (spatial positions, lane axis) ---
    P = Ho * Wo
    tile_p = max(128, (int(tile_p) // 128) * 128)        # lane-aligned tiles
    # Cap tile_p so the per-step (B, tile_p, C) f32 swish intermediate stays <= 8 MiB
    # (keeps the kernel safe when C grows to the real b7 head width on v7x's 64 MiB VMEM).
    act_budget = 8 * 1024 * 1024
    cap = max(128, (act_budget // max(1, B * C * 4)) // 128 * 128)
    tile_p = min(tile_p, cap)
    P128 = _round_up(P, 128)
    tile_p = min(tile_p, P128)
    P_pad = _round_up(P, tile_p)
    if P_pad != P:
        # zero patches -> zero pre-activation -> swish(0)=0 -> contribute nothing to pooled sum
        # TODO(synk): needs an explicit row mask once a real stem (bias / BatchNorm shift) lands.
        patches = jnp.pad(patches, ((0, 0), (0, 0), (0, P_pad - P)))
    num_tiles = P_pad // tile_p

    # --- operand prep: bf16 matmul operands, lane-major fc weight, SMEM scalar bias ---
    patches_bf16 = patches.astype(jnp.bfloat16)
    conv_w_bf16 = conv_w.astype(jnp.bfloat16)
    fc_w_row = fc_w.reshape(1, C).astype(jnp.float32)        # (C,1) -> (1,C)
    fc_b_sc = fc_b.reshape(1, 1).astype(jnp.float32)
    target2d = target.reshape(-1, 1).astype(jnp.float32)     # target.view(-1,1).type_as(out)

    kernel = _make_kernel(1.0 / float(P))

    # CostEstimate counts the actual (sublane-padded) DMA bytes of the streamed operand.
    k_rows = _round_up(K, 16)                # bf16 sublane packing
    c_lanes = _round_up(C, 128)
    cost = pl.CostEstimate(
        flops=2 * B * P_pad * K * C + 6 * B * P_pad * C + 4 * B * C,
        transcendentals=B * P_pad * C + 4,
        bytes_accessed=(B * k_rows * P_pad * 2            # patch tiles (bf16)
                        + k_rows * c_lanes * 2            # stem conv weight (bf16)
                        + c_lanes * 4                     # fc weight row
                        + B * 128 * 4 + 4                 # targets + bias
                        + B * 128 * 4 + 128 * 4),         # logits + loss
    )

    out, loss = pl.pallas_call(
        kernel,
        out_shape=(jax.ShapeDtypeStruct((B, 1), jnp.float32),
                   jax.ShapeDtypeStruct((1, 1), jnp.float32)),
        grid_spec=pltpu.PrefetchScalarGridSpec(
            num_scalar_prefetch=0,
            grid=(num_tiles,),
            in_specs=[
                pl.BlockSpec((B, K, tile_p), lambda p: (0, 0, p)),   # patch tiles (pipelined)
                pl.BlockSpec((K, C), lambda p: (0, 0)),              # stem conv weight (resident)
                pl.BlockSpec((1, C), lambda p: (0, 0)),              # fc weight row (resident)
                pl.BlockSpec((B, 1), lambda p: (0, 0)),              # targets (resident)
                pl.BlockSpec(memory_space=pltpu.MemorySpace.SMEM),   # fc bias scalar
            ],
            out_specs=(pl.BlockSpec((B, 1), lambda p: (0, 0)),
                       pl.BlockSpec((1, 1), lambda p: (0, 0))),
            scratch_shapes=[pltpu.VMEM((B, C), jnp.float32)],        # pooled-sum accumulator
        ),
        compiler_params=pltpu.CompilerParams(
            dimension_semantics=("arbitrary",),      # reduction over the P-tile axis
            vmem_limit_bytes=32 * 1024 * 1024,       # safe headroom on v7x's 64 MiB VMEM
        ),
        cost_estimate=cost,
    )(patches_bf16, conv_w_bf16, fc_w_row, target2d, fc_b_sc)

    return out, loss[0, 0]


if __name__ == "__main__":
    key = jax.random.PRNGKey(0)
    k_img, k_tgt, k_cw, k_fw = jax.random.split(key, 4)

    # small synthetic shapes consistent with the forward pass
    B, Cin, H, W = 2, 3, 32, 32
    C_FEAT = 128                                     # stand-in for _fc.in_features

    image = jax.random.normal(k_img, (B, Cin, H, W), dtype=jnp.float32)
    target = (jax.random.uniform(k_tgt, (B,)) > 0.5).astype(jnp.float32)

    conv_w = 0.1 * jax.random.normal(k_cw, (3 * 3 * Cin, C_FEAT), dtype=jnp.float32)
    fc_w = 0.1 * jax.random.normal(k_fw, (C_FEAT, 1), dtype=jnp.float32)
    fc_b = jnp.zeros((1, 1), dtype=jnp.float32)

    # tile_p=128 so the small test exercises multi-step grid accumulation (P = 16*16 = 256)
    out, loss = net_efficientnet_forward(image, target, conv_w, fc_w, fc_b, tile_p=128)
    jax.block_until_ready((out, loss))
    assert out.shape == (B, 1) and loss.shape == ()
    print("KERNEL_OK")
</pallas_src>

<mosaic_0001>
module attributes {stable_mosaic.version = 11 : i64} {
  func.func @kernel(%arg0: i32, %arg1: memref<2x27x128xbf16, #tpu.memory_space<vmem>>, %arg2: memref<27x128xbf16, #tpu.memory_space<vmem>>, %arg3: memref<1x128xf32, #tpu.memory_space<vmem>>, %arg4: memref<2x1xf32, #tpu.memory_space<vmem>>, %arg5: memref<1x1xf32, #tpu.memory_space<smem>>, %arg6: memref<2x1xf32, #tpu.memory_space<vmem>>, %arg7: memref<1x1xf32, #tpu.memory_space<vmem>>, %arg8: memref<2x128xf32, #tpu.memory_space<vmem>>) attributes {dimension_semantics = [#tpu.dimension_semantics<arbitrary>], iteration_bounds = array<i64: 2>, scalar_prefetch = 0 : i64, scratch_operands = 1 : i64, tpu.core_type = #tpu.core_type<tc>, window_params = [{transform_indices = @transform_0, window_bounds = array<i64: 2, 27, 128>}, {pipeline_mode = #tpu.pipeline_mode<synchronous>, transform_indices = @transform_1, window_bounds = array<i64: 27, 128>}, {pipeline_mode = #tpu.pipeline_mode<synchronous>, transform_indices = @transform_2, window_bounds = array<i64: 1, 128>}, {pipeline_mode = #tpu.pipeline_mode<synchronous>, transform_indices = @transform_3, window_bounds = array<i64: 2, 1>}, {transform_indices = @transform_4, window_bounds = array<i64: 1, 1>}, {pipeline_mode = #tpu.pipeline_mode<synchronous>, transform_indices = @transform_5, window_bounds = array<i64: 2, 1>}, {pipeline_mode = #tpu.pipeline_mode<synchronous>, transform_indices = @transform_6, window_bounds = array<i64: 1, 1>}]} {
    %c0_i32 = arith.constant 0 : i32
    %0 = arith.cmpi eq, %arg0, %c0_i32 : i32
    %1 = arith.extui %0 : i1 to i32
    %c0_i32_0 = arith.constant 0 : i32
    %2 = arith.cmpi ne, %1, %c0_i32_0 : i32
    scf.if %2 {
      %cst_17 = arith.constant 0.000000e+00 : f32
      %33 = vector.broadcast %cst_17 : f32 to vector<2x128xf32>
      %c0_18 = arith.constant 0 : index
      %c0_19 = arith.constant 0 : index
      %34 = vector.load %arg8[%c0_18, %c0_19] : memref<2x128xf32, #tpu.memory_space<vmem>>, vector<2x128xf32>
      tpu.vector_store %arg8[%c0_18, %c0_19], %33 {strides = array<i32>} : memref<2x128xf32, #tpu.memory_space<vmem>>, vector<2x128xf32>,
    } else {
    }
    %c0 = arith.constant 0 : index
    %c0_1 = arith.constant 0 : index
    %3 = vector.load %arg2[%c0, %c0_1] : memref<27x128xbf16, #tpu.memory_space<vmem>>, vector<27x128xbf16>
    %c0_2 = arith.constant 0 : index
    %c0_3 = arith.constant 0 : index
    %c0_4 = arith.constant 0 : index
    %4 = vector.load %arg1[%c0_2, %c0_3, %c0_4] : memref<2x27x128xbf16, #tpu.memory_space<vmem>>, vector<1x27x128xbf16>
    %5 = vector.shape_cast %4 : vector<1x27x128xbf16> to vector<27x128xbf16>
    %cst = arith.constant dense<0.000000e+00> : vector<128x128xf32>
    %6 = tpu.matmul %5, %3, %cst {dimension_numbers = #tpu.dot_dimension_numbers<[0], [0], [1], [1], [0, 1, 1, 1], [], []>} : vector<27x128xbf16>, vector<27x128xbf16>, vector<128x128xf32> -> vector<128x128xf32>
    %7 = arith.negf %6 : vector<128x128xf32>
    %8 = math.exp %7 : vector<128x128xf32>
    %cst_5 = arith.constant 1.000000e+00 : f32
    %9 = vector.broadcast %cst_5 : f32 to vector<128x128xf32>
    %10 = arith.addf %9, %8 : vector<128x128xf32>
    %11 = arith.divf %9, %10 : vector<128x128xf32>
    %12 = arith.mulf %6, %11 : vector<128x128xf32>
    %cst_6 = arith.constant dense<0.000000e+00> : vector<128xf32>
    %13 = vector.multi_reduction <add>, %12, %cst_6 [0] : vector<128x128xf32> to vector<128xf32>
    %14 = vector.shape_cast %13 : vector<128xf32> to vector<1x128xf32>
    %c1 = arith.constant 1 : index
    %c0_7 = arith.constant 0 : index
    %c0_8 = arith.constant 0 : index
    %15 = vector.load %arg1[%c1, %c0_7, %c0_8] : memref<2x27x128xbf16, #tpu.memory_space<vmem>>, vector<1x27x128xbf16>
    %16 = vector.shape_cast %15 : vector<1x27x128xbf16> to vector<27x128xbf16>
    %cst_9 = arith.constant dense<0.000000e+00> : vector<128x128xf32>
    %17 = tpu.matmul %16, %3, %cst_9 {dimension_numbers = #tpu.dot_dimension_numbers<[0], [0], [1], [1], [0, 1, 1, 1], [], []>} : vector<27x128xbf16>, vector<27x128xbf16>, vector<128x128xf32> -> vector<128x128xf32>
    %18 = arith.negf %17 : vector<128x128xf32>
    %19 = math.exp %18 : vector<128x128xf32>
    %cst_10 = arith.constant 1.000000e+00 : f32
    %20 = vector.broadcast %cst_10 : f32 to vector<128x128xf32>
    %21 = arith.addf %20, %19 : vector<128x128xf32>
    %22 = arith.divf %20, %21 : vector<128x128xf32>
    %23 = arith.mulf %17, %22 : vector<128x128xf32>
    %cst_11 = arith.constant dense<0.000000e+00> : vector<128xf32>
    %24 = vector.multi_reduction <add>, %23, %cst_11 [0] : vector<128x128xf32> to vector<128xf32>
    %25 = vector.shape_cast %24 : vector<128xf32> to vector<1x128xf32>
    %c0_12 = arith.constant 0 : index
    %c0_13 = arith.constant 0 : index
    %26 = vector.load %arg8[%c0_12, %c0_13] : memref<2x128xf32, #tpu.memory_space<vmem>>, vector<2x128xf32>
    %27 = tpu.concatenate %14, %25 in 0 : vector<1x128xf32>, vector<1x128xf32> -> vector<2x128xf32>
    %28 = arith.addf %26, %27 : vector<2x128xf32>
    %c0_14 = arith.constant 0 : index
    %c0_15 = arith.constant 0 : index
    %29 = vector.load %arg8[%c0_14, %c0_15] : memref<2x128xf32, #tpu.memory_space<vmem>>, vector<2x128xf32>
    tpu.vector_store %arg8[%c0_14, %c0_15], %28 {strides = array<i32>} : memref<2x128xf32, #tpu.memory_space<vmem>>, vector<2x128xf32>,
    %c1_i32 = arith.constant 1 : i32
    %30 = arith.cmpi eq, %arg0, %c1_i32 : i32
    %31 = arith.extui %30 : i1 to i32
    %c0_i32_16 = arith.constant 0 : i32
    %32 = arith.cmpi ne, %31, %c0_i32_16 : i32
    scf.if %32 {
      %c0_17 = arith.constant 0 : index
      %c0_18 = arith.constant 0 : index
      %33 = vector.load %arg8[%c0_17, %c0_18] : memref<2x128xf32, #tpu.memory_space<vmem>>, vector<2x128xf32>
      %cst_19 = arith.constant 3.906250e-03 : f32
      %34 = vector.broadcast %cst_19 : f32 to vector<2x128xf32>
      %35 = arith.mulf %33, %34 : vector<2x128xf32>
      %c0_20 = arith.constant 0 : index
      %c0_21 = arith.constant 0 : index
      %36 = vector.load %arg3[%c0_20, %c0_21] : memref<1x128xf32, #tpu.memory_space<vmem>>, vector<1x128xf32>
      %37 = vector.broadcast %36 : vector<1x128xf32> to vector<2x128xf32>
      %38 = arith.mulf %35, %37 : vector<2x128xf32>
      %cst_22 = arith.constant dense<0.000000e+00> : vector<2xf32>
      %39 = vector.multi_reduction <add>, %38, %cst_22 [1] : vector<2x128xf32> to vector<2xf32>
      %40 = vector.shape_cast %39 : vector<2xf32> to vector<2x1xf32>
      %c0_23 = arith.constant 0 : index
      %c0_24 = arith.constant 0 : index
      %41 = memref.load %arg5[%c0_23, %c0_24] : memref<1x1xf32, #tpu.memory_space<smem>>
      %42 = vector.broadcast %41 : f32 to vector<2x1xf32>
      %43 = arith.addf %40, %42 : vector<2x1xf32>
      %c0_25 = arith.constant 0 : index
      %c0_26 = arith.constant 0 : index
      %44 = vector.load %arg6[%c0_25, %c0_26] : memref<2x1xf32, #tpu.memory_space<vmem>>, vector<2x1xf32>
      tpu.vector_store %arg6[%c0_25, %c0_26], %43 {strides = array<i32>} : memref<2x1xf32, #tpu.memory_space<vmem>>, vector<2x1xf32>,
      %c0_27 = arith.constant 0 : index
      %c0_28 = arith.constant 0 : index
      %45 = vector.load %arg4[%c0_27, %c0_28] : memref<2x1xf32, #tpu.memory_space<vmem>>, vector<2x1xf32>
      %cst_29 = arith.constant 0.000000e+00 : f32
      %46 = vector.broadcast %cst_29 : f32 to vector<2x1xf32>
      %47 = arith.maximumf %43, %46 : vector<2x1xf32>
      %48 = arith.mulf %43, %45 : vector<2x1xf32>
      %49 = arith.subf %47, %48 : vector<2x1xf32>
      %50 = math.absf %43 : vector<2x1xf32>
      %cst_30 = arith.constant 0.000000e+00 : f32
      %51 = vector.broadcast %cst_30 : f32 to vector<2x1xf32>
      %52 = arith.subf %51, %50 : vector<2x1xf32>
      %53 = math.exp %52 : vector<2x1xf32>
      %54 = math.log1p %53 : vector<2x1xf32>
      %55 = arith.addf %49, %54 : vector<2x1xf32>
      %56 = vector.shape_cast %55 : vector<2x1xf32> to vector<1x2x1xf32>
      %cst_31 = arith.constant dense<0.000000e+00> : vector<1xf32>
      %57 = vector.multi_reduction <add>, %56, %cst_31 [1, 2] : vector<1x2x1xf32> to vector<1xf32>
      %58 = vector.shape_cast %57 : vector<1xf32> to vector<1x1x1xf32>
      %59 = vector.extract %58[0, 0, 0] : f32 from vector<1x1x1xf32>
      %cst_32 = arith.constant 2.000000e+00 : f32
      %60 = arith.divf %59, %cst_32 : f32
      %cst_33 = arith.constant 0.000000e+00 : f32
      %61 = arith.subf %cst_33, %60 : f32
      %62 = math.exp %61 : f32
      %cst_34 = arith.constant 1.000000e+00 : f32
      %63 = arith.subf %cst_34, %62 : f32
      %64 = arith.mulf %63, %63 : f32
      %cst_35 = arith.constant 1.000000e+00 : f32
      %65 = arith.mulf %cst_35, %64 : f32
      %66 = arith.mulf %65, %60 : f32
      %67 = vector.broadcast %66 : f32 to vector<1x1xf32>
      %c0_36 = arith.constant 0 : index
      %c0_37 = arith.constant 0 : index
      %68 = vector.load %arg7[%c0_36, %c0_37] : memref<1x1xf32, #tpu.memory_space<vmem>>, vector<1x1xf32>
      tpu.vector_store %arg7[%c0_36, %c0_37], %67 {strides = array<i32>} : memref<1x1xf32, #tpu.memory_space<vmem>>, vector<1x1xf32>,
    } else {
    }
    return
  }
  func.func @transform_0(%arg0: i32) -> (i32, i32, i32) {
    %c0_i32 = arith.constant 0 : i32
    %c0_i32_0 = arith.constant 0 : i32
    %c0_i32_1 = arith.constant 0 : i32
    return %c0_i32, %c0_i32_0, %arg0 : i32, i32, i32
  }
  func.func @transform_1(%arg0: i32) -> (i32, i32) {
    %c0_i32 = arith.constant 0 : i32
    %c0_i32_0 = arith.constant 0 : i32
    %c0_i32_1 = arith.constant 0 : i32
    return %c0_i32, %c0_i32_0 : i32, i32
  }
  func.func @transform_2(%arg0: i32) -> (i32, i32) {
    %c0_i32 = arith.constant 0 : i32
    %c0_i32_0 = arith.constant 0 : i32
    %c0_i32_1 = arith.constant 0 : i32
    return %c0_i32, %c0_i32_0 : i32, i32
  }
  func.func @transform_3(%arg0: i32) -> (i32, i32) {
    %c0_i32 = arith.constant 0 : i32
    %c0_i32_0 = arith.constant 0 : i32
    %c0_i32_1 = arith.constant 0 : i32
    return %c0_i32, %c0_i32_0 : i32, i32
  }
  func.func @transform_4(%arg0: i32) -> (i32, i32) {
    %c0_i32 = arith.constant 0 : i32
    %c0_i32_0 = arith.constant 0 : i32
    %c0_i32_1 = arith.constant 0 : i32
    return %c0_i32, %c0_i32_0 : i32, i32
  }
  func.func @transform_5(%arg0: i32) -> (i32, i32) {
    %c0_i32 = arith.constant 0 : i32
    %c0_i32_0 = arith.constant 0 : i32
    %c0_i32_1 = arith.constant 0 : i32
    return %c0_i32, %c0_i32_0 : i32, i32
  }
  func.func @transform_6(%arg0: i32) -> (i32, i32) {
    %c0_i32 = arith.constant 0 : i32
    %c0_i32_0 = arith.constant 0 : i32
    %c0_i32_1 = arith.constant 0 : i32
    return %c0_i32, %c0_i32_0 : i32, i32
  }
}

</mosaic_0001>

<bundles_post_ra>
// kernel: tpu_custom_call.1
= control target key start
LH: loop header
LB: loop body
LE: loop exit
PB: predicated region body
PF: predicated region fallthrough
CT: control target
= control target key end

     0   :  { %s1677_s0 = inlined_call_operand.vmem [shape: bf16[2,27,256], index: 0, kind: input, shape index: {}]   ;;  %s1678_s1 = inlined_call_operand.vmem [shape: bf16[27,128], index: 1, kind: input, shape index: {}]   ;;  %s1679_s2 = inlined_call_operand.vmem [shape: f32[1,128], index: 2, kind: input, shape index: {}]   ;;  %s1680_s3 = inlined_call_operand.vmem [shape: f32[2,1], index: 3, kind: input, shape index: {}]   ;;  %s1681_s4 = inlined_call_operand.<no memory space> [shape: f32[1,1], index: 4, kind: input, shape index: {}]   ;;  %s1682_s5 = inlined_call_operand.vmem [shape: f32[2,1], index: 5, kind: output, shape index: {0}]   ;;  %s1683_s6 = inlined_call_operand.hbm [shape: f32[1,1], index: 6, kind: output, shape index: {1}]  }
   0x1   :  { %12 = sst [smem:[#allocation3]] %s1681_s4 }
   0x2   :  { %13 = vsyncpa [#allocation6], 0  ;;  %s1441_s23 = smov 0   ;;  %s1443_s24 = smov 0  }
   0x3   :  { %s1445_s25 = smov 0  }
   0x4 LB: > { %s1457_s4 = sadd.s32 4294967295, %s1398_s25   ;;  %s1460_s26 = sadd.s32 1, %s1398_s25   ;;  %s1398_s25 = sphi %s1445_s25, %s1686_s25   ;;  %s1394_s24 = sphi %s1443_s24, %s1685_s24   ;;  %s1390_s23 = sphi %s1441_s23, %s1684_s23  }
   0x5   : > { %s23_s27 = ssub.s32 %s1398_s25, %s1460_s26  ;;  %s26_s28 = sadd.s32 1, %s1394_s24 }
   0x6   : > { %p24_p0 = scmp.eq.s32.totalorder %s23_s27, 0  ;;  %p33_p1 = scmp.ne.s32.totalorder %s1394_s24, %s1390_s23 }
   0x7   : > { %p34_p2 = scmp.eq.s32.totalorder %s1398_s25, 0  ;;  %p1040_p4 = scmp.ge.s32.totalorder %s1398_s25, 2 }
   0x8   : > { %s1469_s29 = scalar_select %p24_p0, %s1394_s24, %s26_s28  }
   0x9   : > { %p35_p3 = por %p34_p2, %p33_p1  ;;  %197 = sbr.rel (%p1040_p4) target bundleno = 23 (0x17), region = 32 }
   0xe   : > { %200 = sbr.rel (!%p35_p3) target bundleno = 23 (0x17), region = 36  ;;  %s202_s30 = sand.u32 (%p35_p3), 1, %s1394_s24  }
   0xf   : > { %s1042_s7 = sshll.u32 (%p35_p3), %s1398_s25, 2  ;;  %s1041_s8 = sshll.u32 (%p35_p3), %s202_s30, 5 }
  0x10   : > { %s206_s11 = scalar_lea.vmem (%p35_p3), %s1677_s0, %s1042_s7  ;;  %s204_s12 = scalar_lea.vmem (%p35_p3), [#allocation4], %s1041_s8 }
  0x11   : > { %v223_v0 = vld [vmem:[%s206_s11] sm:$0xf] (%p35_p3)  ;;  %v225_v1 = vld [vmem:[%s206_s11 + $0x8] sm:$0xf] (%p35_p3)  ;;  %v227_v2 = vld [vmem:[%s206_s11 + $0x10] sm:$0xf] (%p35_p3) }
  0x12   : > { %224 = vst [vmem:[%s204_s12] sm:$0xf] (%p35_p3), %v223_v0  ;;  %226 = vst [vmem:[%s204_s12 + $0x4] sm:$0xf] (%p35_p3), %v225_v1  ;;  %v229_v3 = vld [vmem:[%s206_s11 + $0x18] sm:$0xf] (%p35_p3) }
  0x13   : > { %v231_v4 = vld [vmem:[%s206_s11 + $0x20] sm:$0xf]  ;;  %228 = vst [vmem:[%s204_s12 + $0x8] sm:$0xf] %v227_v2  ;;  %230 = vst [vmem:[%s204_s12 + $0xc] sm:$0xf] %v229_v3 }
  0x14   : > { %232 = vst [vmem:[%s204_s12 + $0x10] sm:$0xf] %v231_v4  ;;  %v233_v5 = vld [vmem:[%s206_s11 + $0x28] sm:$0xf]  ;;  %v235_v6 = vld [vmem:[%s206_s11 + $0x30] sm:$0xf] }
  0x15   : > { %v237_v7 = vld [vmem:[%s206_s11 + $0x38] sm:$0xf]  ;;  %234 = vst [vmem:[%s204_s12 + $0x14] sm:$0xf] %v233_v5  ;;  %236 = vst [vmem:[%s204_s12 + $0x18] sm:$0xf] %v235_v6 }
  0x16   : > { %238 = vst [vmem:[%s204_s12 + $0x1c] sm:$0xf] %v237_v7 }
  0x17 PF: > { %p1043_p5 = scmp.ge.s32.totalorder %s1398_s25, 1  ;;  %p277_p6 = scmp.lt.s32.totalorder %s1398_s25, 3 }
  0x19   : > { %p278_p7 = pnand %p1043_p5, %p277_p6 }
  0x1a   : > { %s284_s13 = sand.u32 (!%p278_p7), 1, %s1390_s23   ;;  %p1045_p8 = scmp.ne.s32.totalorder (!%p278_p7), %s1457_s4, 0 }
  0x1b   : > { %281 = sbr.rel (%p278_p7) target bundleno = 927 (0x39f), region = 77  ;;  %s1044_s14 = sshll.u32 (!%p278_p7), %s284_s13, 5 }
  0x1c   : > { %s286_s15 = scalar_lea.vmem (!%p278_p7), [#allocation4], %s1044_s14 }
  0x20   : > { %312 = sbr.rel (%p1045_p8) target bundleno = 39 (0x27), region = 85 }
  0x25   : > { %v1400_v8 = vmov 0.0  }
  0x26   : > { %313 = vst [vmem:[#allocation2] sm:$0x3] %v1400_v8 }
  0x27 PF: > { %v1208_v9 = vld [vmem:[%s286_s15 + $0x10] sm:$0xff]   ;;  %v1209_v10 = vld [vmem:[%s286_s15] sm:$0xff]   ;;  %vm386_vm0 = vcmask 1044480   ;;  %v1210_v11 = vld [vmem:[%s286_s15 + $0x18] sm:$0x3f]   ;;  %vm387_vm1 = vcmask 1045504  }
  0x28   : > { %640 = vxpose.xlu1.c.b16.start [1/2] (short) %v1208_v9, 128  ;;  %334 = vxpose.xlu0.c.b16.start [1/2] (short) %v1209_v10, 128  ;;  %v1211_v12 = vld [vmem:[%s286_s15 + $0x8] sm:$0x3f]   ;;  %v1401_v14 = vmov 65535   ;;  %v1213_v18 = vld [vmem:[%s1678_s1] sm:$0xff]   ;;  %vm361_vm2 = vcmask 220160   ;;  %vm911_vm3 = vcmask 1040384  }
  0x29   : > { %v1212_v13 = vld [vmem:[%s1678_s1 + $0x8] sm:$0x3f]   ;;  %v388_v15 = vsel %vm386_vm0, 4294967295, %v1401_v14  ;;  %p1104_p9 = scmp.ne.s32.totalorder %s1457_s4, 1 }
  0x2a   : > { %v389_v16 = vsel %vm387_vm1, %v388_v15, 0  ;;  %s933_s22 = sld [smem:[#allocation3]] (!%p1104_p9) }
  0x2b   : > { %v391_v17 = vand.u32 %v1212_v13, %v389_v16 }
  0x2c   : > { %641 = vxpose.xlu1.c.b16.end [2/2] (short) %v1210_v11, 128  ;;  %335 = vxpose.xlu0.c.b16.end [2/2] (short) %v1211_v12, 128 }
  0x2d   : > { %1130 = vmatprep.subr.bf16.mxu0 %v391_v17  ;;  %1150 = vmatprep.subr.bf16.mxu1 %v391_v17 }
  0x2e   : > { %1131 = vmatpush3.bf16.msra.mxu0 %v391_v17  ;;  %1151 = vmatpush3.bf16.msra.mxu1 %v391_v17 }
  0x2f   : > { %1132 = vmatprep.subr.bf16.mxu0 %v1213_v18  ;;  %1152 = vmatprep.subr.bf16.mxu1 %v1213_v18 }
  0x32   : > { %1133 = vmatpush3.bf16.msra.mxu0 %v1213_v18  ;;  %1153 = vmatpush3.bf16.msra.mxu1 %v1213_v18 }
  0x8a   : > { %v648_v19 = vpop.trf.xlu1  ;;  %v342_v20 = vpop.trf.xlu0 }
  0x8b   : > { %1154 = vmatprep.mubr.msk.bf16.mxu1 %vm361_vm2, %v648_v19  ;;  %1134 = vmatprep.mubr.msk.bf16.mxu0 %vm361_vm2, %v342_v20 }
  0x8e   : > { %v649_v21 = vpop.trf.xlu1  ;;  %v343_v22 = vpop.trf.xlu0 }
  0x8f   : > { %1155 = vmatmul.mubr.msk.bf16.vlgmr.msra.gmra.mxu1 %vm361_vm2, %v649_v21  ;;  %1135 = vmatmul.mubr.msk.bf16.vlgmr.msra.gmra.mxu0 %vm361_vm2, %v343_v22 }
  0x92   : > { %v650_v23 = vpop.trf.xlu1  ;;  %v344_v24 = vpop.trf.xlu0 }
  0x93   : > { %1158 = vmatprep.mubr.msk.bf16.mxu1 %vm361_vm2, %v650_v23  ;;  %1138 = vmatprep.mubr.msk.bf16.mxu0 %vm361_vm2, %v344_v24 }
  0x96   : > { %v651_v25 = vpop.trf.xlu1  ;;  %v345_v26 = vpop.trf.xlu0 }
  0x97   : > { %1159 = vmatmul.mubr.msk.bf16.gmra.mxu1 %vm361_vm2, %v651_v25  ;;  %1139 = vmatmul.mubr.msk.bf16.gmra.mxu0 %vm361_vm2, %v345_v26 }
  0x9a   : > { %v652_v27 = vpop.trf.xlu1  ;;  %v346_v28 = vpop.trf.xlu0 }
  0x9b   : > { %1162 = vmatprep.mubr.msk.bf16.mxu1 %vm361_vm2, %v652_v27  ;;  %1142 = vmatprep.mubr.msk.bf16.mxu0 %vm361_vm2, %v346_v28 }
  0x9e   : > { %v653_v29 = vpop.trf.xlu1  ;;  %v347_v30 = vpop.trf.xlu0 }
  0x9f   : > { %1163 = vmatmul.mubr.msk.bf16.gmra.mxu1 %vm361_vm2, %v653_v29  ;;  %1143 = vmatmul.mubr.msk.bf16.gmra.mxu0 %vm361_vm2, %v347_v30 }
  0xa2   : > { %v654_v31 = vpop.trf.xlu1  ;;  %v348_v32 = vpop.trf.xlu0 }
  0xa3   : > { %1166 = vmatprep.mubr.msk.bf16.mxu1 %vm361_vm2, %v654_v31  ;;  %1146 = vmatprep.mubr.msk.bf16.mxu0 %vm361_vm2, %v348_v32 }
  0xa6   : > { %v655_v33 = vpop.trf.xlu1  ;;  %v349_v34 = vpop.trf.xlu0 }
  0xa7   : > { %1167 = vmatmul.mubr.msk.bf16.gmra.mxu1 %vm361_vm2, %v655_v33  ;;  %1147 = vmatmul.mubr.msk.bf16.gmra.mxu0 %vm361_vm2, %v349_v34 }
 0x14f   : > { %v1503_v35 = vpop.f32.mrf.mxu1  ;;  %v1505_v36 = vpop.f32.mrf.mxu0 }
 0x150   : > { %v1090_v37 = vmul.f32 -1.442695, %v1503_v35  ;;  %v1060_v38 = vmul.f32 -1.442695, %v1505_v36 }
 0x151   : > { %v1509_v39 = vpop.f32.mrf.mxu1  ;;  %v1511_v40 = vpop.f32.mrf.mxu0 }
 0x152   : > { %1214 = vpow2.f32 %v1090_v37  ;;  %v1088_v41 = vmul.f32 -1.442695, %v1509_v39  ;;  %v1058_v42 = vmul.f32 -1.442695, %v1511_v40 }
 0x153   : > { %1216 = vpow2.f32 %v1060_v38  ;;  %v1515_v43 = vpop.f32.mrf.mxu1  ;;  %v1517_v44 = vpop.f32.mrf.mxu0 }
 0x154   : > { %1218 = vpow2.f32 %v1088_v41  ;;  %v1091_v45 = vmul.f32 -1.442695, %v1515_v43  ;;  %v1061_v46 = vmul.f32 -1.442695, %v1517_v44 }
 0x155   : > { %1220 = vpow2.f32 %v1058_v42  ;;  %v1521_v47 = vpop.f32.mrf.mxu1  ;;  %v1523_v48 = vpop.f32.mrf.mxu0 }
 0x156   : > { %1222 = vpow2.f32 %v1091_v45  ;;  %v1089_v49 = vmul.f32 -1.442695, %v1521_v47  ;;  %v1059_v50 = vmul.f32 -1.442695, %v1523_v48 }
 0x157   : > { %1224 = vpow2.f32 %v1061_v46  ;;  %v1527_v51 = vpop.f32.mrf.mxu1  ;;  %v1529_v52 = vpop.f32.mrf.mxu0 }
 0x158   : > { %1226 = vpow2.f32 %v1089_v49  ;;  %v1094_v53 = vmul.f32 -1.442695, %v1527_v51  ;;  %v1064_v54 = vmul.f32 -1.442695, %v1529_v52 }
 0x159   : > { %1228 = vpow2.f32 %v1059_v50  ;;  %v1533_v55 = vpop.f32.mrf.mxu1  ;;  %v1535_v56 = vpop.f32.mrf.mxu0 }
 0x15a   : > { %1230 = vpow2.f32 %v1094_v53  ;;  %v1092_v57 = vmul.f32 -1.442695, %v1533_v55  ;;  %v1062_v58 = vmul.f32 -1.442695, %v1535_v56 }
 0x15b   : > { %1232 = vpow2.f32 %v1064_v54  ;;  %v1539_v59 = vpop.f32.mrf.mxu1  ;;  %v1541_v60 = vpop.f32.mrf.mxu0 }
 0x15c   : > { %1234 = vpow2.f32 %v1092_v57  ;;  %v1095_v61 = vmul.f32 -1.442695, %v1539_v59  ;;  %v1065_v62 = vmul.f32 -1.442695, %v1541_v60 }
 0x15d   : > { %1236 = vpow2.f32 %v1062_v58  ;;  %v1545_v63 = vpop.f32.mrf.mxu1  ;;  %v1547_v0 = vpop.f32.mrf.mxu0 }
 0x15e   : > { %1238 = vpow2.f32 %v1095_v61  ;;  %v1093_v1 = vmul.f32 -1.442695, %v1545_v63  ;;  %v1063_v3 = vmul.f32 -1.442695, %v1547_v0 }
 0x15f   : > { %v1215_v2 = vpop.eup %1214  ;;  %1240 = vpow2.f32 %v1065_v62  ;;  %v1551_v4 = vpop.f32.mrf.mxu1 }
 0x160   : > { %v1217_v5 = vpop.eup %1216  ;;  %v827_v6 = vadd.f32 1.0, %v1215_v2  ;;  %1242 = vpow2.f32 %v1093_v1  ;;  %v1553_v7 = vpop.f32.mrf.mxu0  ;;  %v1098_v61 = vmul.f32 -1.442695, %v1551_v4 }
 0x161   : > { %v1219_v8 = vpop.eup %1218  ;;  %v540_v9 = vadd.f32 1.0, %v1217_v5  ;;  %1244 = vpow2.f32 %v1063_v3  ;;  %v1557_v13 = vpop.f32.mrf.mxu1  ;;  %v1068_v53 = vmul.f32 -1.442695, %v1553_v7 }
 0x162   : > { %v1221_v10 = vpop.eup %1220  ;;  %1246 = vrcp.f32 %v827_v6  ;;  %v825_v11 = vadd.f32 1.0, %v1219_v8  ;;  %v1555_v12 = vpop.f32.mrf.mxu0  ;;  %v1096_v3 = vmul.f32 -1.442695, %v1557_v13 }
 0x163   : > { %v1223_v14 = vpop.eup %1222  ;;  %1248 = vrcp.f32 %v540_v9  ;;  %v538_v15 = vadd.f32 1.0, %v1221_v10  ;;  %v1561_v23 = vpop.f32.mrf.mxu1  ;;  %v1066_v1 = vmul.f32 -1.442695, %v1555_v12 }
 0x164   : > { %v1225_v16 = vpop.eup %1224  ;;  %1250 = vrcp.f32 %v825_v11  ;;  %v828_v17 = vadd.f32 1.0, %v1223_v14  ;;  %v1559_v20 = vpop.f32.mrf.mxu0  ;;  %v1099_v11 = vmul.f32 -1.442695, %v1561_v23 }
 0x165   : > { %v1227_v18 = vpop.eup %1226  ;;  %1252 = vrcp.f32 %v538_v15  ;;  %v541_v19 = vadd.f32 1.0, %v1225_v16  ;;  %v1565_v33 = vpop.f32.mrf.mxu1  ;;  %v1069_v8 = vmul.f32 -1.442695, %v1559_v20 }
 0x166   : > { %v1229_v21 = vpop.eup %1228  ;;  %1254 = vrcp.f32 %v828_v17  ;;  %v826_v22 = vadd.f32 1.0, %v1227_v18  ;;  %v1563_v30 = vpop.f32.mrf.mxu0  ;;  %v1097_v17 = vmul.f32 -1.442695, %v1565_v33 }
 0x167   : > { %v1231_v24 = vpop.eup %1230  ;;  %1256 = vrcp.f32 %v541_v19  ;;  %v539_v25 = vadd.f32 1.0, %v1229_v21  ;;  %v1570_v54 = vpop.f32.mrf.mxu1  ;;  %v1067_v15 = vmul.f32 -1.442695, %v1563_v30 }
 0x168   : > { %v1233_v26 = vpop.eup %1232  ;;  %1258 = vrcp.f32 %v826_v22  ;;  %v831_v27 = vadd.f32 1.0, %v1231_v24  ;;  %v1567_v46 = vpop.f32.mrf.mxu0  ;;  %v1102_v24 = vmul.f32 -1.442695, %v1570_v54 }
 0x169   : > { %v1235_v28 = vpop.eup %1234  ;;  %1260 = vrcp.f32 %v539_v25  ;;  %v544_v29 = vadd.f32 1.0, %v1233_v26  ;;  %v1578_v9 = vpop.f32.mrf.mxu1  ;;  %v1072_v22 = vmul.f32 -1.442695, %v1567_v46 }
 0x16a   : > { %v1237_v31 = vpop.eup %1236  ;;  %1262 = vrcp.f32 %v831_v27  ;;  %v829_v32 = vadd.f32 1.0, %v1235_v28  ;;  %v1575_v5 = vpop.f32.mrf.mxu0 }
 0x16b   : > { %v1239_v34 = vpop.eup %1238  ;;  %1264 = vrcp.f32 %v544_v29  ;;  %v542_v37 = vadd.f32 1.0, %v1237_v31  ;;  %v1588_v25 = vpop.f32.mrf.mxu1 }
 0x16c   : > { %v1241_v38 = vpop.eup %1240  ;;  %1266 = vrcp.f32 %v829_v32  ;;  %v832_v41 = vadd.f32 1.0, %v1239_v34  ;;  %v1583_v18 = vpop.f32.mrf.mxu0 }
 0x16d   : > { %v1243_v42 = vpop.eup %1242  ;;  %1268 = vrcp.f32 %v542_v37  ;;  %v545_v45 = vadd.f32 1.0, %v1241_v38  ;;  %v1100_v38 = vmul.f32 -1.442695, %v1578_v9 }
 0x16e   : > { %v1245_v49 = vpop.eup %1244  ;;  %1270 = vrcp.f32 %v832_v41  ;;  %v830_v50 = vadd.f32 1.0, %v1243_v42  ;;  %v1599_v41 = vpop.f32.mrf.mxu0 }
 0x16f   : > { %v1247_v57 = vpop.eup %1246  ;;  %1272 = vrcp.f32 %v545_v45  ;;  %v543_v58 = vadd.f32 1.0, %v1245_v49 }
 0x170   : > { %v1249_v62 = vpop.eup %1248  ;;  %1274 = vrcp.f32 %v830_v50  ;;  %v875_v49 = vmul.f32 %v1247_v57, %v1503_v35  ;;  %v1103_v50 = vmul.f32 -1.442695, %v1588_v25 }
 0x171   : > { %v1251_v2 = vpop.eup %1250  ;;  %1276 = vrcp.f32 %v543_v58 }
 0x172   : > { %v1253_v6 = vpop.eup %1252  ;;  %1278 = vpow2.f32 %v1068_v53  ;;  %v873_v28 = vmul.f32 %v1251_v2, %v1509_v39  ;;  %v1073_v39 = vmul.f32 -1.442695, %v1583_v18 }
 0x173   : > { %v1255_v10 = vpop.eup %1254  ;;  %1280 = vpow2.f32 %v1098_v61  ;;  %v586_v27 = vmul.f32 %v1253_v6, %v1511_v40  ;;  %v588_v40 = vmul.f32 %v1249_v62, %v1505_v36  ;;  %v1071_v61 = vmul.f32 -1.442695, %v1599_v41 }
 0x174   : > { %v1257_v14 = vpop.eup %1256  ;;  %1282 = vpow2.f32 %v1066_v1  ;;  %v876_v35 = vmul.f32 %v1255_v10, %v1515_v43 }
 0x175   : > { %v1259_v16 = vpop.eup %1258  ;;  %1284 = vpow2.f32 %v1096_v3  ;;  %v589_v3 = vmul.f32 %v1257_v14, %v1517_v44 }
 0x176   : > { %v1261_v19 = vpop.eup %1260  ;;  %v874_v21 = vmul.f32 %v1259_v16, %v1521_v47  ;;  %1286 = vpow2.f32 %v1069_v8  ;;  %v1070_v47 = vmul.f32 -1.442695, %v1575_v5 }
 0x177   : > { %v1590_v26 = vpop.eup %1262  ;;  %v587_v29 = vmul.f32 %v1261_v19, %v1523_v48  ;;  %1288 = vpow2.f32 %v1099_v11  ;;  %v1603_v48 = vpop.f32.mrf.mxu1 }
 0x178   : > { %v1595_v31 = vpop.eup %1264  ;;  %1290 = vpow2.f32 %v1067_v15  ;;  %v889_v37 = vadd.f32 %v874_v21, %v873_v28  ;;  %v1101_v62 = vmul.f32 -1.442695, %v1603_v48 }
 0x179   : > { %v1267_v32 = vpop.eup %1266  ;;  %v602_v34 = vadd.f32 %v587_v29, %v586_v27  ;;  %1292 = vpow2.f32 %v1097_v17 }
 0x17a   : > { %v1269_v42 = vpop.eup %1268  ;;  %1294 = vpow2.f32 %v1072_v22  ;;  %v890_v36 = vadd.f32 %v889_v37, %v875_v49 }
 0x17b   : > { %v1605_v45 = vpop.eup %1270  ;;  %1296 = vpow2.f32 %v1102_v24  ;;  %v603_v58 = vadd.f32 %v602_v34, %v588_v40  ;;  %v590_v17 = vmul.f32 %v1269_v42, %v1535_v56  ;;  %v877_v24 = vmul.f32 %v1267_v32, %v1533_v55 }
 0x17c   : > { %v1609_v53 = vpop.eup %1272  ;;  %1298 = vpow2.f32 %v1070_v47  ;;  %v891_v15 = vadd.f32 %v890_v36, %v876_v35 }
 0x17d   : > { %v1275_v1 = vpop.eup %1274  ;;  %1300 = vpow2.f32 %v1100_v38  ;;  %v604_v8 = vadd.f32 %v603_v58, %v589_v3 }
 0x17e   : > { %v1277_v2 = vpop.eup %1276  ;;  %1302 = vpow2.f32 %v1073_v39  ;;  %v892_v29 = vadd.f32 %v891_v15, %v877_v24  ;;  %v878_v47 = vmul.f32 %v1275_v1, %v1545_v63  ;;  %v879_v1 = vmul.f32 %v1590_v26, %v1527_v51 }
 0x17f   : > { %v1279_v6 = vpop.eup %1278  ;;  %1304 = vpow2.f32 %v1103_v50  ;;  %v605_v28 = vadd.f32 %v604_v8, %v590_v17  ;;  %v591_v43 = vmul.f32 %v1277_v2, %v1547_v0  ;;  %v592_v50 = vmul.f32 %v1595_v31, %v1529_v52 }
 0x180   : > { %v1281_v57 = vpop.eup %1280  ;;  %1306 = vpow2.f32 %v1071_v61  ;;  %v548_v19 = vadd.f32 1.0, %v1279_v6  ;;  %v893_v49 = vadd.f32 %v892_v29, %v878_v47  ;;  %v593_v52 = vmul.f32 %v1609_v53, %v1541_v60 }
 0x181   : > { %v1283_v11 = vpop.eup %1282  ;;  %1308 = vpow2.f32 %v1101_v62  ;;  %v835_v44 = vadd.f32 1.0, %v1281_v57  ;;  %v606_v40 = vadd.f32 %v605_v28, %v591_v43 }
 0x182   : > { %v1285_v16 = vpop.eup %1284  ;;  %v546_v21 = vadd.f32 1.0, %v1283_v11  ;;  %v894_v35 = vadd.f32 %v893_v49, %v879_v1  ;;  %v880_v11 = vmul.f32 %v1605_v45, %v1539_v59 }
 0x183   : > { %v1287_v22 = vpop.eup %1286  ;;  %v833_v14 = vadd.f32 1.0, %v1285_v16  ;;  %v607_v3 = vadd.f32 %v606_v40, %v592_v50 }
 0x184   : > { %v1289_v27 = vpop.eup %1288  ;;  %1310 = vrcp.f32 %v546_v21  ;;  %v549_v56 = vadd.f32 1.0, %v1287_v22  ;;  %v895_v17 = vadd.f32 %v894_v35, %v880_v11 }
 0x185   : > { %v1291_v10 = vpop.eup %1290  ;;  %1312 = vrcp.f32 %v833_v14  ;;  %v836_v42 = vadd.f32 1.0, %v1289_v27  ;;  %v608_v15 = vadd.f32 %v607_v3, %v593_v52 }
 0x186   : > { %v1293_v34 = vpop.eup %1292  ;;  %1314 = vrcp.f32 %v548_v19  ;;  %v547_v37 = vadd.f32 1.0, %v1291_v10 }
 0x187   : > { %v1295_v38 = vpop.eup %1294  ;;  %1316 = vrcp.f32 %v835_v44  ;;  %v834_v55 = vadd.f32 1.0, %v1293_v34 }
 0x188   : > { %v1297_v32 = vpop.eup %1296  ;;  %1318 = vrcp.f32 %v547_v37  ;;  %v552_v63 = vadd.f32 1.0, %v1295_v38 }
 0x189   : > { %v1299_v39 = vpop.eup %1298  ;;  %1320 = vrcp.f32 %v834_v55  ;;  %v839_v36 = vadd.f32 1.0, %v1297_v32 }
 0x18a   : > { %v1301_v0 = vpop.eup %1300  ;;  %1322 = vrcp.f32 %v549_v56  ;;  %v550_v58 = vadd.f32 1.0, %v1299_v39 }
 0x18b   : > { %v1303_v61 = vpop.eup %1302  ;;  %1324 = vrcp.f32 %v836_v42  ;;  %v837_v62 = vadd.f32 1.0, %v1301_v0 }
 0x18c   : > { %v1305_v2 = vpop.eup %1304  ;;  %1326 = vrcp.f32 %v550_v58  ;;  %v553_v31 = vadd.f32 1.0, %v1303_v61 }
 0x18d   : > { %v1307_v6 = vpop.eup %1306  ;;  %1328 = vrcp.f32 %v837_v62  ;;  %v840_v51 = vadd.f32 1.0, %v1305_v2 }
 0x18e   : > { %v1309_v57 = vpop.eup %1308  ;;  %1330 = vrcp.f32 %v552_v63  ;;  %v551_v8 = vadd.f32 1.0, %v1307_v6 }
 0x18f   : > { %1332 = vrcp.f32 %v839_v36  ;;  %v838_v26 = vadd.f32 1.0, %v1309_v57 }
 0x190   : > { %1334 = vrcp.f32 %v551_v8 }
 0x191   : > { %v1311_v16 = vpop.eup %1310  ;;  %1336 = vrcp.f32 %v838_v26 }
 0x192   : > { %v1313_v19 = vpop.eup %1312  ;;  %v594_v21 = vmul.f32 %v1311_v16, %v1555_v12  ;;  %1338 = vrcp.f32 %v553_v31 }
 0x193   : > { %v1315_v22 = vpop.eup %1314  ;;  %v881_v60 = vmul.f32 %v1313_v19, %v1557_v13  ;;  %1340 = vrcp.f32 %v840_v51 }
 0x194   : > { %v1317_v53 = vpop.eup %1316  ;;  %v609_v24 = vadd.f32 %v608_v15, %v594_v21  ;;  %v596_v10 = vmul.f32 %v1315_v22, %v1553_v7 }
 0x195   : > { %v1319_v44 = vpop.eup %1318  ;;  %v896_v59 = vadd.f32 %v895_v17, %v881_v60  ;;  %v883_v47 = vmul.f32 %v1317_v53, %v1551_v4 }
 0x196   : > { %v1321_v45 = vpop.eup %1320  ;;  %v595_v14 = vmul.f32 %v1319_v44, %v1563_v30 }
 0x197   : > { %v1323_v27 = vpop.eup %1322  ;;  %v882_v28 = vmul.f32 %v1321_v45, %v1565_v33 }
 0x198   : > { %v1325_v43 = vpop.eup %1324  ;;  %v610_v29 = vadd.f32 %v609_v24, %v595_v14  ;;  %v597_v56 = vmul.f32 %v1323_v27, %v1559_v20 }
 0x199   : > { %v1327_v12 = vpop.eup %1326  ;;  %v897_v34 = vadd.f32 %v896_v59, %v882_v28  ;;  %v884_v42 = vmul.f32 %v1325_v43, %v1561_v23 }
 0x19a   : > { %v1329_v13 = vpop.eup %1328  ;;  %v611_v37 = vadd.f32 %v610_v29, %v596_v10  ;;  %v598_v32 = vmul.f32 %v1327_v12, %v1575_v5 }
 0x19b   : > { %v1331_v38 = vpop.eup %1330  ;;  %v898_v55 = vadd.f32 %v897_v34, %v883_v47  ;;  %v885_v7 = vmul.f32 %v1329_v13, %v1578_v9 }
 0x19c   : > { %v1333_v30 = vpop.eup %1332  ;;  %v612_v33 = vadd.f32 %v611_v37, %v597_v56  ;;  %v600_v23 = vmul.f32 %v1331_v38, %v1567_v46 }
 0x19d   : > { %v1335_v40 = vpop.eup %1334  ;;  %v899_v39 = vadd.f32 %v898_v55, %v884_v42  ;;  %v887_v1 = vmul.f32 %v1333_v30, %v1570_v54 }
 0x19e   : > { %v1337_v49 = vpop.eup %1336  ;;  %v613_v0 = vadd.f32 %v612_v33, %v598_v32  ;;  %v599_v4 = vmul.f32 %v1335_v40, %v1599_v41 }
 0x19f   : > { %v1339_v50 = vpop.eup %1338  ;;  %v900_v63 = vadd.f32 %v899_v39, %v885_v7  ;;  %v886_v20 = vmul.f32 %v1337_v49, %v1603_v48 }
 0x1a0   : > { %v1341_v58 = vpop.eup %1340  ;;  %v614_v61 = vadd.f32 %v613_v0, %v599_v4  ;;  %v601_v36 = vmul.f32 %v1339_v50, %v1583_v18  ;;  %v910_v18 = vld [vmem:[#allocation2] sm:$0x3] }
 0x1a1   : > { %v901_v5 = vadd.f32 %v900_v63, %v886_v20  ;;  %v888_v9 = vmul.f32 %v1341_v58, %v1588_v25 }
 0x1a2   : > { %v615_v62 = vadd.f32 %v614_v61, %v600_v23 }
 0x1a3   : > { %v902_v2 = vadd.f32 %v901_v5, %v887_v1 }
 0x1a4   : > { %v616_v3 = vadd.f32 %v615_v62, %v601_v36 }
 0x1a5   : > { %v903_v6 = vadd.f32 %v902_v2, %v888_v9 }
 0x1a6   : > { %v617_v41 = vrot.slane %v616_v3, 4 }
 0x1a7   : > { %v904_v35 = vrot.slane %v903_v6, 4 }
 0x1a8   : > { %v618_v57 = vadd.f32 %v617_v41, %v616_v3 }
 0x1a9   : > { %v905_v52 = vadd.f32 %v904_v35, %v903_v6 }
 0x1aa   : > { %v619_v48 = vrot.slane %v618_v57, 2 }
 0x1ab   : > { %v906_v31 = vrot.slane %v905_v52, 2 }
 0x1ac   : > { %v620_v8 = vadd.f32 %v619_v48, %v618_v57 }
 0x1ad   : > { %v907_v46 = vadd.f32 %v906_v31, %v905_v52 }
 0x1ae   : > { %v621_v11 = vrot.slane %v620_v8, 1 }
 0x1af   : > { %v908_v51 = vrot.slane %v907_v46, 1 }
 0x1b0   : > { %v622_v54 = vadd.f32 %v621_v11, %v620_v8 }
 0x1b1   : > { %v909_v26 = vadd.f32 %v908_v51, %v907_v46 }
 0x1b2   : > { %918 = sbr.rel (%p1104_p9) target bundleno = 912 (0x390), region = 89 }
 0x1b3   : > { %v912_v15 = vsel %vm911_vm3, %v622_v54, %v909_v26 }
 0x1b4   : > { %v913_v16 = vadd.f32 %v912_v15, %v910_v18 }
 0x1b6   : > { %914 = vst [vmem:[#allocation2] sm:$0x3] %v913_v16 }
 0x1b7   : > { %v1105_v17 = vld [vmem:[%s1679_s2] ss:$0 sm:$0xff]  ;;  %vm929_vm4 = vcmask 1041408   ;;  %v934_v60 = vstv %s933_s22  ;;  %vm936_vm5 = vcmask 1024   ;;  %vm978_vm7 = vcmask 0  }
 0x1b8   : > { %v938_v43 = vld [vmem:[%s1680_s3] sm:$0x3] }
 0x1bd   : > { %v919_v25 = vld [vmem:[#allocation2] sm:$0x3] }
 0x1be   : > { %v920_v19 = vmul.f32 0.00390625, %v919_v25 }
 0x1c0   : > { %v928_v21 = vmul.f32 %v1105_v17, %v920_v19 }
 0x1c2   : > { %v930_v22 = vsel %vm929_vm4, %v928_v21, 0.0 }
 0x1c3   : > { %931 = vadd.xlane.f32.xlu0 %v930_v22 }
 0x24c   : > { %v932_v53 = vpop.xlane.xlu0 %931 }
 0x24d   : > { %v935_v24 = vadd.f32 %v934_v60, %v932_v53 }
 0x24f   : > { %v942_v44 = vand.u32 2147483647, %v935_v24  ;;  %937 = vst.msk [vmem:[%s1682_s5] sm:$0x3] %vm936_vm5, %v935_v24  ;;  %v939_v29 = vmax.f32 %v935_v24, 0.0  ;;  %v940_v12 = vmul.f32 %v938_v43, %v935_v24 }
 0x251   : > { %v943_v59 = vsub.f32 0.0, %v942_v44  ;;  %v941_v37 = vsub.f32 %v939_v29, %v940_v12 }
 0x253   : > { %v944_v45 = vmul.f32 1.442695, %v943_v59 }
 0x255   : > { %1342 = vpow2.f32 %v944_v45 }
 0x262   : > { %v1343_v14 = vpop.eup %1342 }
 0x263   : > { %v946_v27 = vadd.f32 1.0, %v1343_v14  ;;  %v949_v28 = vmul.f32 -0.5, %v1343_v14  ;;  %v952_v47 = vand.u32 2147483647, %v1343_v14 }
 0x265   : > { %1344 = vlog2.f32 %v946_v27  ;;  %v950_v10 = vadd.f32 1.0, %v949_v28  ;;  %vm953_vm6 = vcmp.lt.f32.partialorder %v952_v47, 0.0004427343 }
 0x267   : > { %v951_v56 = vmul.f32 %v1343_v14, %v950_v10 }
 0x272   : > { %v1345_v34 = vpop.eup %1344 }
 0x273   : > { %v948_v13 = vmul.f32 0.6931472, %v1345_v34 }
 0x275   : > { %v954_v38 = vsel %vm953_vm6, %v951_v56, %v948_v13 }
 0x276   : > { %v955_v42 = vadd.f32 %v954_v38, %v941_v37 }
 0x278   : > { %v956_v55 = vsel %vm936_vm5, %v955_v42, 0.0 }
 0x279   : > { %957 = vadd.xlane.f32.xlu0 %v956_v55 }
 0x302   : > { %v958_v30 = vpop.xlane.xlu0 %957 }
 0x303   : > { %v959_v32 = vrot.slane %v958_v30, 4 }
 0x305   : > { %v960_v33 = vadd.f32 %v959_v32, %v958_v30 }
 0x307   : > { %v961_v40 = vrot.slane %v960_v33, 2 }
 0x309   : > { %v962_v7 = vadd.f32 %v961_v40, %v960_v33 }
 0x30b   : > { %v963_v39 = vrot.slane %v962_v7, 1 }
 0x30d   : > { %v964_v49 = vadd.f32 %v963_v39, %v962_v7 }
 0x30f   : > { %1170 = vpush %v964_v49 }
 0x340   : > { %s1171_s30 = spop %1170 }
 0x341   : > { %s968_s7 = smul.f32 0.5, %s1171_s30 }
 0x343   : > { %s969_s8 = ssub.f32 0.0, %s968_s7 }
 0x345   : > { %v970_v0 = vstv %s969_s8 }
 0x346   : > { %v971_v4 = vmul.f32 1.442695, %v970_v0 }
 0x348   : > { %1346 = vpow2.f32 %v971_v4 }
 0x355   : > { %v1347_v50 = vpop.eup %1346 }
 0x356   : > { %1172 = vpush %v1347_v50 }
 0x387   : > { %s1173_s9 = spop %1172 }
 0x388   : > { %s974_s10 = ssub.f32 1.0, %s1173_s9 }
 0x38a   : > { %s975_s11 = smul.f32 %s974_s10, %s974_s10 }
 0x38c   : > { %s976_s12 = smul.f32 %s975_s11, %s968_s7 }
 0x38e   : > { %v977_v63 = vstv %s976_s12 }
 0x38f   : > { %979 = vst.msk [vmem:[#allocation5] sm:$0x1] %vm978_vm7, %v977_v63 }
 0x390 PF: > { %p1178_p10 = scmp.eq.s32.totalorder %s1457_s4, 1  ;;  %s1402_s13 = smov [#allocation5]  }
 0x391   : > { %s990_s14 = sshll.u32 %s1402_s13, 4  ;;  %s991_s14 = int_to_ptr.vmem [resolvable:$true] %s990_s14 }
 0x392   : > { %s1348_s15 = scalar_lea.vmem %s991_s14, 16  ;;  %s1354_s16 = scalar_lea.vmem %s991_s14, 32 }
 0x393   : > { %p1349_p11 = scmp.ne.s32.totalorder %s991_s14, %s1348_s15  ;;  %p1355_p0 = scmp.lt.s32.totalorder %s991_s14, %s991_s14 }
 0x394   : > { %p1356_p1 = scmp.lt.s32.totalorder %s1354_s16, %s1348_s15 }
 0x395   : > { %p1350_p12 = pnand %p1349_p11, %p1178_p10 }
 0x396   : > { %p1357_p2 = por %p1356_p1, %p1355_p0 }
 0x397   : > { %p1351_p13 = pneg %p1350_p12 }
 0x399   : > { %p1358_p3 = pnand %p1357_p2, %p1351_p13 }
 0x39b   : > { %1361 = shalt.err (!%p1358_p3)
}
 0x39c   : > { %1175 = dma.vmem_to_hbm [thread:$0]  (%p1178_p10), %s991_s14, 16, %s1683_s6, [#allocation6]  }
 0x39d   : > { %1385 = dma.done.wait (%p1178_p10), [#allocation6], 16  }
 0x39e   : > { %1387 = vsyncadd (%p1178_p10), [#allocation6], 4294967280 }
 0x39f PF: > { %p16_p4 = scmp.ge.s32.totalorder %s1460_s26, 4   ;;  %s1684_s23 = smov %s1394_s24 }
 0x3a0   : > { %s1685_s24 = smov %s1469_s29  ;;  %s1686_s25 = smov %s1460_s26 }
 0x3a1   :  { %18 = sbr.rel (!%p16_p4) target bundleno = 4 (0x4), region = 130 }
 0x3a6   :  { %1006 = vsyncpa [#allocation6], 1 }
 0x3a7   :  { %1008 = vsyncpa [#allocation6 + $0x1], 1 }

</bundles_post_ra>
